<compile_context>
chip_gen: v7x
topology: tpu7x:2x2x1
jax: 0.10.0
libtpu: 0.0.40
codegen_flags: <defaults>
</compile_context>

<pallas_src>
import jax
import jax.numpy as jnp
from jax.experimental import pallas as pl
from jax.experimental.pallas import tpu as pltpu


def _copy_kernel(x_ref, o_ref):
    # Straight copy of the current tile: out = in (forward returns data as-is).
    o_ref[...] = x_ref[...]


def _round_up(a: int, b: int) -> int:
    return pl.cdiv(a, b) * b


def _vmem_capacity_bytes() -> int:
    """Trace-time VMEM capacity query; conservative (v7x-sized) fallback."""
    try:
        info = pltpu.get_tpu_info()
        cap = getattr(info, "vmem_capacity_bytes", None)
        if cap:
            return int(cap)
    except Exception:
        pass
    return 64 * 1024 * 1024


def _tile_params(itemsize: int):
    """Generation-aware tile sizing.

    Resident footprint ~= 4 * block_bytes (double-buffered in + out), kept
    well under the physical VMEM of the smallest target (v7x: 64 MiB).
    """
    vmem_cap = _vmem_capacity_bytes()
    if vmem_cap >= 96 * 1024 * 1024:       # v5e / v6e: 128 MiB VMEM
        block_bytes = 8 * 1024 * 1024      # ~32 MiB resident
        vmem_limit = 64 * 1024 * 1024
    else:                                   # v7x: 64 MiB physical VMEM
        block_bytes = 4 * 1024 * 1024      # ~16 MiB resident
        vmem_limit = 32 * 1024 * 1024
    # Sublane multiple by dtype packing: 8 (4-byte), 16 (2-byte), 32 (1-byte).
    sub_mult = max(8, 32 // itemsize)
    return block_bytes, vmem_limit, sub_mult


def _identity_copy_pallas(data: jax.Array) -> jax.Array:
    """Materialized identity copy of `data` via a lane-dense Pallas kernel."""
    total = int(data.size)
    if total == 0:
        return data

    itemsize = jnp.dtype(data.dtype).itemsize
    block_bytes, vmem_limit, sub_mult = _tile_params(itemsize)

    # Largest lane-dense last dim (multiple of 128) that divides the element
    # count -> no pad / slice needed, stores are full unmasked 128-lane vst.
    lane = next((l for l in (1024, 512, 256, 128) if total % l == 0), None)

    if lane is None:
        # TODO(synk): rare unaligned fallback (element count not a multiple of
        # 128): pad + slice add extra HBM traffic; the optimal path for this
        # identity module is the default `return data` in model_template_forward.
        lane = 1024
        rows = pl.cdiv(total, lane)
        flat = jnp.pad(data.reshape(-1), (0, rows * lane - total))
        padded = True
    else:
        rows = total // lane
        flat = data.reshape(-1)
        padded = False

    x2d = flat.reshape(rows, lane)
    tensor_bytes = rows * lane * itemsize

    # Multi-MiB row tiles, rounded to the dtype's sublane multiple.
    block_rows = max(sub_mult,
                     (block_bytes // (lane * itemsize)) // sub_mult * sub_mult)
    if rows <= block_rows:
        if tensor_bytes >= (2 << 20) and rows >= 2 * sub_mult:
            # Give v7x's two TensorCores work on the "parallel" axis.
            block_rows = _round_up(pl.cdiv(rows, 2), sub_mult)
        else:
            block_rows = rows  # single block == full extent (always legal)
    grid = (pl.cdiv(rows, block_rows),)

    out = pl.pallas_call(
        _copy_kernel,
        out_shape=jax.ShapeDtypeStruct((rows, lane), data.dtype),
        grid_spec=pltpu.PrefetchScalarGridSpec(
            num_scalar_prefetch=0,
            grid=grid,
            in_specs=[pl.BlockSpec((block_rows, lane), lambda i: (i, 0))],
            out_specs=pl.BlockSpec((block_rows, lane), lambda i: (i, 0)),
        ),
        cost_estimate=pl.CostEstimate(
            flops=0,
            transcendentals=0,
            bytes_accessed=2 * total * itemsize,
        ),
        compiler_params=pltpu.CompilerParams(
            dimension_semantics=("parallel",),
            vmem_limit_bytes=vmem_limit,
        ),
    )(x2d)

    if padded:
        return out.reshape(-1)[:total].reshape(data.shape)
    return out.reshape(data.shape)


def model_template_forward(data: jax.Array, *, force_copy_kernel: bool = False) -> jax.Array:
    """ModelTemplate.forward(data) -> data (identity).

    Default path returns `data` unchanged (zero HBM traffic -- the true
    roofline for this op).  With force_copy_kernel=True the tensor is routed
    through the Pallas identity-copy kernel (explicit materialized copy).
    """
    if not force_copy_kernel:
        return data
    return _identity_copy_pallas(data)


if __name__ == "__main__":
    key = jax.random.PRNGKey(0)

    # Primary input: small NCHW activation-like tensor.
    x = jax.random.normal(key, (2, 4, 16, 16), dtype=jnp.float32)

    # Default (reference-faithful, zero-cost) path.
    y0 = jax.block_until_ready(model_template_forward(x))
    assert y0.shape == x.shape and y0.dtype == x.dtype
    assert bool(jnp.array_equal(y0, x))

    # Pallas identity-copy kernel path (lane-dense, no pad/slice).
    y1 = jax.block_until_ready(model_template_forward(x, force_copy_kernel=True))
    assert y1.shape == x.shape and y1.dtype == x.dtype
    assert bool(jnp.array_equal(y1, x))

    # bf16 input exercises the dtype-aware (16-row) sublane rounding.
    xb = jax.random.normal(jax.random.PRNGKey(0), (2, 8, 16, 32), dtype=jnp.bfloat16)
    yb = jax.block_until_ready(model_template_forward(xb, force_copy_kernel=True))
    assert yb.shape == xb.shape and yb.dtype == xb.dtype
    assert bool(jnp.array_equal(yb, xb))

    # Awkward (non-128-divisible) shape exercises the fallback path.
    x2 = jax.random.normal(jax.random.PRNGKey(0), (3, 5, 7), dtype=jnp.float32)
    y2 = jax.block_until_ready(model_template_forward(x2, force_copy_kernel=True))
    assert y2.shape == x2.shape and bool(jnp.array_equal(y2, x2))

    print("KERNEL_OK")
</pallas_src>

<mosaic_0001>
module attributes {stable_mosaic.version = 11 : i64} {
  func.func @_copy_kernel(%arg0: i32, %arg1: memref<2x1024xf32, #tpu.memory_space<vmem>>, %arg2: memref<2x1024xf32, #tpu.memory_space<vmem>>) attributes {dimension_semantics = [#tpu.dimension_semantics<parallel>], iteration_bounds = array<i64: 1>, scalar_prefetch = 0 : i64, scratch_operands = 0 : i64, tpu.core_type = #tpu.core_type<tc>, window_params = [{transform_indices = @transform_0, window_bounds = array<i64: 2, 1024>}, {transform_indices = @transform_1, window_bounds = array<i64: 2, 1024>}]} {
    %c0 = arith.constant 0 : index
    %c0_0 = arith.constant 0 : index
    %0 = vector.load %arg1[%c0, %c0_0] : memref<2x1024xf32, #tpu.memory_space<vmem>>, vector<2x1024xf32>
    %c0_1 = arith.constant 0 : index
    %c0_2 = arith.constant 0 : index
    %1 = vector.load %arg2[%c0_1, %c0_2] : memref<2x1024xf32, #tpu.memory_space<vmem>>, vector<2x1024xf32>
    tpu.vector_store %arg2[%c0_1, %c0_2], %0 {strides = array<i32>} : memref<2x1024xf32, #tpu.memory_space<vmem>>, vector<2x1024xf32>,
    return
  }
  func.func @transform_0(%arg0: i32) -> (i32, i32) {
    %c0_i32 = arith.constant 0 : i32
    %c0_i32_0 = arith.constant 0 : i32
    return %arg0, %c0_i32 : i32, i32
  }
  func.func @transform_1(%arg0: i32) -> (i32, i32) {
    %c0_i32 = arith.constant 0 : i32
    %c0_i32_0 = arith.constant 0 : i32
    return %arg0, %c0_i32 : i32, i32
  }
}

</mosaic_0001>

<bundles_post_ra>
// kernel: tpu_custom_call.1
= control target key start
LH: loop header
LB: loop body
LE: loop exit
PB: predicated region body
PF: predicated region fallthrough
CT: control target
= control target key end

     0   :  { %6 = vsyncpa [#allocation3], 0  ;;  %s126_s0 = inlined_call_operand.hbm [shape: f32[2,1024], index: 0, kind: input, shape index: {}]   ;;  %s127_s1 = inlined_call_operand.hbm [shape: f32[2,1024], index: 1, kind: output, shape index: {}]  }
   0x1   :  { %7 = vsyncpa [#allocation4], 0  ;;  %s90_s6 = smov [#allocation2]   ;;  %s42_s10 = scalar_lea.hbm %s126_s0, 256 }
   0x2   :  { %s14_s7 = sshll.u32 %s90_s6, 4  ;;  %p43_p0 = scmp.ne.s32.totalorder %s126_s0, %s42_s10  ;;  %s15_s7 = int_to_ptr.vmem [resolvable:$true] %s14_s7 }
   0x3   :  { %p46_p1 = scmp.lt.u32.totalorder %s42_s10, %s126_s0 }
   0x5   :  { %p48_p2 = pnand %p46_p1, %p43_p0 }
   0x7   :  { %51 = shalt.err (!%p48_p2)
}
   0x8   :  { %s52_s15 = scalar_lea.vmem %s15_s7, 256  ;;  %p57_p4 = scmp.lt.s32.totalorder %s15_s7, %s15_s7 }
   0x9   :  { %p53_p3 = scmp.ne.s32.totalorder %s15_s7, %s52_s15  ;;  %p58_p5 = scmp.lt.s32.totalorder %s52_s15, %s52_s15 }
   0xb   :  { %p59_p6 = por %p58_p5, %p57_p4 }
   0xd   :  { %p60_p7 = pnand %p59_p6, %p53_p3 }
   0xf   :  { %63 = shalt.err (!%p60_p7)
}
  0x10   :  { %17 = dma.hbm_to_vmem [thread:$0]  %s126_s0, 256, %s15_s7, [#allocation3]  }
  0x11   :  { %86 = dma.done.wait [#allocation3], 256  }
  0x12   :  { %87 = vsyncadd [#allocation3], 4294967040  ;;  %s91_s18 = smov [#allocation5]   ;;  %v21_v0 = vld [vmem:[#allocation2] sm:$0xff]  ;;  %v22_v1 = vld [vmem:[#allocation2 + $0x8] sm:$0xff] }
  0x13   :  { %s31_s19 = sshll.u32 %s91_s18, 4  ;;  %23 = vst [vmem:[#allocation5] sm:$0xff] %v21_v0  ;;  %24 = vst [vmem:[#allocation5 + $0x8] sm:$0xff] %v22_v1  ;;  %s32_s19 = int_to_ptr.vmem [resolvable:$true] %s31_s19 }
  0x14   :  { %s64_s20 = scalar_lea.vmem %s32_s19, 256  ;;  %p69_p9 = scmp.lt.s32.totalorder %s32_s19, %s32_s19 }
  0x15   :  { %p65_p8 = scmp.ne.s32.totalorder %s32_s19, %s64_s20  ;;  %p70_p10 = scmp.lt.s32.totalorder %s64_s20, %s64_s20 }
  0x17   :  { %p71_p11 = por %p70_p10, %p69_p9 }
  0x19   :  { %p72_p12 = pnand %p71_p11, %p65_p8 }
  0x1b   :  { %75 = shalt.err (!%p72_p12)
}
  0x1c   :  { %s76_s0 = scalar_lea.hbm %s127_s1, 256 }
  0x1d   :  { %p77_p13 = scmp.ne.s32.totalorder %s127_s1, %s76_s0  ;;  %p80_p0 = scmp.lt.u32.totalorder %s76_s0, %s127_s1 }
  0x1f   :  { %p82_p1 = pnand %p80_p0, %p77_p13 }
  0x21   :  { %85 = shalt.err (!%p82_p1)
}
  0x22   :  { %34 = dma.vmem_to_hbm [thread:$0]  %s32_s19, 256, %s127_s1, [#allocation4]  }
  0x23   :  { %88 = dma.done.wait [#allocation4], 256  }
  0x24   :  { %89 = vsyncadd [#allocation4], 4294967040 }
  0x25   :  { %38 = vsyncpa [#allocation3], 1 }
  0x26   :  { %39 = vsyncpa [#allocation4], 1 }

</bundles_post_ra>
